<compile_context>
chip_gen: v7x
topology: tpu7x:2x2x1
jax: 0.10.0
libtpu: 0.0.40
codegen_flags: <defaults>
</compile_context>

<pallas_src>
import jax
import jax.numpy as jnp
import numpy as np
from jax import lax
from jax.experimental import pallas as pl
from jax.experimental.pallas import tpu as pltpu


def _round_up(x, m):
    return ((x + m - 1) // m) * m


def _make_dice_partials_kernel(lb, L, needs_col_mask):
    def kernel(x_ref, t_ref, out_ref):
        j = pl.program_id(1)  # column (reduction) axis — "arbitrary", last

        x = x_ref[...].astype(jnp.float32)
        t = t_ref[...].astype(jnp.float32)  # PyTorch: target.float()

        if needs_col_mask:
            # Ragged last column block: Pallas leaves out-of-range lanes with
            # unspecified data — zero them (select, not multiply, to kill NaNs).
            lane = lax.broadcasted_iota(jnp.int32, x.shape, dimension=1)
            valid = (lane + j * lb) < L
            x = jnp.where(valid, x, 0.0)
            t = jnp.where(valid, t, 0.0)

        # Row-wise partial reductions, fused into a single (rb, 2) tile:
        #   col 0: sum_hw(x * t)        col 1: sum_hw(x) + sum_hw(t)
        p_inter = jnp.sum(x * t, axis=1, keepdims=True)
        p_sums = jnp.sum(x + t, axis=1, keepdims=True)
        partial = jnp.concatenate([p_inter, p_sums], axis=1)  # (rb, 2)

        @pl.when(j == 0)
        def _():
            out_ref[...] = jnp.zeros_like(out_ref)

        out_ref[...] += partial

    return kernel


def multiclass_dice_loss(inp, tgt, weights=None):
    """inp, tgt: (N, C, H, W) (one-hot target). weights: optional (C,). Returns scalar f32."""
    N, C, H, W = inp.shape
    assert tgt.shape == (N, C, H, W)

    R = N * C
    L = H * W
    # No dtype cast here: stream inputs at their native (possibly narrow) dtype.
    x = inp.reshape(R, L)
    t = tgt.reshape(R, L)

    x_item = jnp.dtype(x.dtype).itemsize
    t_item = jnp.dtype(t.dtype).itemsize
    max_item = max(x_item, t_item)

    # ---- tile sizing: lane-dense, ~4 MiB per input block, no host-side padding ----
    block_budget = 4 * 1024 * 1024  # bytes per input block (per pipeline buffer)
    lb_cap = 4096                   # lanes per block when streaming large planes

    if L <= lb_cap:
        lb = L                      # block dim == full array dim (always legal)
        needs_col_mask = False
    else:
        lb = lb_cap                 # multiple of 128
        needs_col_mask = (L % lb) != 0

    if R < 8:
        rb = R                      # block dim == full array dim
    else:
        rb_fit = (R // 8) * 8       # largest multiple of 8 that is <= R
        rb_cap_mem = max(8, (block_budget // (lb * max_item)) // 8 * 8)
        rb = min(rb_fit, rb_cap_mem, 512)
        # Megacore (v7x): try to give the "parallel" row axis >= 2 blocks.
        if pl.cdiv(R, rb) == 1 and R > 8:
            rb = min(rb_fit, max(8, _round_up(pl.cdiv(R, 2), 8)))

    grid = (pl.cdiv(R, rb), pl.cdiv(L, lb))

    # VMEM budget: 2 inputs x 2 pipeline buffers x block + tiny output + slack.
    vmem_needed = 2 * rb * lb * (x_item + t_item) + 4 * rb * 2 * 4 + (2 << 20)
    vmem_limit = int(min(max(vmem_needed, 16 << 20), 40 << 20))

    kernel = _make_dice_partials_kernel(lb, L, needs_col_mask)

    partials = pl.pallas_call(
        kernel,
        out_shape=jax.ShapeDtypeStruct((R, 2), jnp.float32),
        grid=grid,
        in_specs=[
            pl.BlockSpec((rb, lb), lambda i, j: (i, j)),
            pl.BlockSpec((rb, lb), lambda i, j: (i, j)),
        ],
        out_specs=pl.BlockSpec((rb, 2), lambda i, j: (i, 0)),
        compiler_params=pltpu.CompilerParams(
            dimension_semantics=("parallel", "arbitrary"),
            vmem_limit_bytes=vmem_limit,
        ),
    )(x, t)

    # ---- finalize (tiny, in plain JAX; matches the PyTorch per-class reduction) ----
    inter = partials[:, 0].reshape(N, C)
    sums = partials[:, 1].reshape(N, C)
    dice = 2.0 * inter / (sums + jnp.float32(1e-20))           # (N, C)
    per_class = 1.0 - jnp.sum(dice, axis=0) / jnp.float32(N)   # (C,)
    if weights is not None:
        per_class = per_class * weights.astype(jnp.float32)
    return jnp.sum(per_class)


def _reference(inp, tgt, weights=None):
    """Pure-JAX reference matching the PyTorch forward (f32 accumulation)."""
    N, C, H, W = inp.shape
    smooth = 1e-20
    total = 0.0
    for i in range(C):
        xf = inp[:, i, :, :].reshape(N, -1).astype(jnp.float32)
        tf = tgt[:, i, :, :].reshape(N, -1).astype(jnp.float32)
        inter = (xf * tf).sum(1)
        loss = 2.0 * inter / (xf.sum(1) + tf.sum(1) + smooth)
        loss = 1.0 - loss.sum() / N
        if weights is not None:
            loss = loss * weights[i].astype(jnp.float32)
        total = total + loss
    return total


if __name__ == "__main__":
    key = jax.random.PRNGKey(0)
    k1, k2, k3 = jax.random.split(key, 3)

    # ---- Case 1: small f32 inputs, whole spatial extent in one lane block ----
    N, C, H, W = 2, 4, 16, 16
    logits = jax.random.normal(k1, (N, C, H, W), dtype=jnp.float32)
    inp = jax.nn.softmax(logits, axis=1)
    labels = jax.random.randint(k2, (N, H, W), 0, C)
    tgt = jax.nn.one_hot(labels, C, axis=1, dtype=jnp.float32)  # (N, C, H, W)
    wts = jax.random.uniform(k3, (C,), dtype=jnp.float32)

    loss = jax.block_until_ready(multiclass_dice_loss(inp, tgt))
    ref = jax.block_until_ready(_reference(inp, tgt))
    np.testing.assert_allclose(np.asarray(loss), np.asarray(ref), rtol=1e-5, atol=1e-5)

    loss_w = jax.block_until_ready(multiclass_dice_loss(inp, tgt, wts))
    ref_w = jax.block_until_ready(_reference(inp, tgt, wts))
    np.testing.assert_allclose(np.asarray(loss_w), np.asarray(ref_w), rtol=1e-5, atol=1e-5)

    # ---- Case 2: native bf16 streaming + ragged column block (exercises masking) ----
    N2, C2, H2, W2 = 2, 4, 72, 72   # H*W = 5184 > 4096 and not a multiple of 4096
    logits2 = jax.random.normal(k1, (N2, C2, H2, W2), dtype=jnp.float32)
    inp2 = jax.nn.softmax(logits2, axis=1).astype(jnp.bfloat16)
    labels2 = jax.random.randint(k2, (N2, H2, W2), 0, C2)
    tgt2 = jax.nn.one_hot(labels2, C2, axis=1, dtype=jnp.bfloat16)

    loss2 = jax.block_until_ready(multiclass_dice_loss(inp2, tgt2, wts))
    ref2 = jax.block_until_ready(_reference(inp2, tgt2, wts))
    np.testing.assert_allclose(np.asarray(loss2), np.asarray(ref2), rtol=1e-4, atol=1e-4)

    print("KERNEL_OK")
</pallas_src>

<mosaic_0001>
module attributes {stable_mosaic.version = 11 : i64} {
  func.func @kernel(%arg0: i32, %arg1: i32, %arg2: memref<8x256xf32, #tpu.memory_space<vmem>>, %arg3: memref<8x256xf32, #tpu.memory_space<vmem>>, %arg4: memref<8x2xf32, #tpu.memory_space<vmem>>) attributes {dimension_semantics = [#tpu.dimension_semantics<parallel>, #tpu.dimension_semantics<arbitrary>], iteration_bounds = array<i64: 1, 1>, scalar_prefetch = 0 : i64, scratch_operands = 0 : i64, tpu.core_type = #tpu.core_type<tc>, window_params = [{transform_indices = @transform_0, window_bounds = array<i64: 8, 256>}, {transform_indices = @transform_1, window_bounds = array<i64: 8, 256>}, {transform_indices = @transform_2, window_bounds = array<i64: 8, 2>}]} {
    %c0 = arith.constant 0 : index
    %c0_0 = arith.constant 0 : index
    %0 = vector.load %arg2[%c0, %c0_0] : memref<8x256xf32, #tpu.memory_space<vmem>>, vector<8x256xf32>
    %c0_1 = arith.constant 0 : index
    %c0_2 = arith.constant 0 : index
    %1 = vector.load %arg3[%c0_1, %c0_2] : memref<8x256xf32, #tpu.memory_space<vmem>>, vector<8x256xf32>
    %2 = arith.mulf %0, %1 : vector<8x256xf32>
    %cst = arith.constant dense<0.000000e+00> : vector<8xf32>
    %3 = vector.multi_reduction <add>, %2, %cst [1] : vector<8x256xf32> to vector<8xf32>
    %4 = vector.shape_cast %3 : vector<8xf32> to vector<8x1xf32>
    %5 = arith.addf %0, %1 : vector<8x256xf32>
    %cst_3 = arith.constant dense<0.000000e+00> : vector<8xf32>
    %6 = vector.multi_reduction <add>, %5, %cst_3 [1] : vector<8x256xf32> to vector<8xf32>
    %7 = vector.shape_cast %6 : vector<8xf32> to vector<8x1xf32>
    %8 = tpu.concatenate %4, %7 in 1 : vector<8x1xf32>, vector<8x1xf32> -> vector<8x2xf32>
    %c0_i32 = arith.constant 0 : i32
    %9 = arith.cmpi eq, %arg1, %c0_i32 : i32
    %10 = arith.extui %9 : i1 to i32
    %c0_i32_4 = arith.constant 0 : i32
    %11 = arith.cmpi ne, %10, %c0_i32_4 : i32
    scf.if %11 {
      %cst_9 = arith.constant 0.000000e+00 : f32
      %15 = vector.broadcast %cst_9 : f32 to vector<8x2xf32>
      %c0_10 = arith.constant 0 : index
      %c0_11 = arith.constant 0 : index
      %16 = vector.load %arg4[%c0_10, %c0_11] : memref<8x2xf32, #tpu.memory_space<vmem>>, vector<8x2xf32>
      tpu.vector_store %arg4[%c0_10, %c0_11], %15 {strides = array<i32>} : memref<8x2xf32, #tpu.memory_space<vmem>>, vector<8x2xf32>,
    } else {
    }
    %c0_5 = arith.constant 0 : index
    %c0_6 = arith.constant 0 : index
    %12 = vector.load %arg4[%c0_5, %c0_6] : memref<8x2xf32, #tpu.memory_space<vmem>>, vector<8x2xf32>
    %13 = arith.addf %12, %8 : vector<8x2xf32>
    %c0_7 = arith.constant 0 : index
    %c0_8 = arith.constant 0 : index
    %14 = vector.load %arg4[%c0_7, %c0_8] : memref<8x2xf32, #tpu.memory_space<vmem>>, vector<8x2xf32>
    tpu.vector_store %arg4[%c0_7, %c0_8], %13 {strides = array<i32>} : memref<8x2xf32, #tpu.memory_space<vmem>>, vector<8x2xf32>,
    return
  }
  func.func @transform_0(%arg0: i32, %arg1: i32) -> (i32, i32) {
    %c0_i32 = arith.constant 0 : i32
    return %arg0, %arg1 : i32, i32
  }
  func.func @transform_1(%arg0: i32, %arg1: i32) -> (i32, i32) {
    %c0_i32 = arith.constant 0 : i32
    return %arg0, %arg1 : i32, i32
  }
  func.func @transform_2(%arg0: i32, %arg1: i32) -> (i32, i32) {
    %c0_i32 = arith.constant 0 : i32
    %c0_i32_0 = arith.constant 0 : i32
    return %arg0, %c0_i32 : i32, i32
  }
}

</mosaic_0001>

<bundles_post_ra>
// kernel: tpu_custom_call.1
= control target key start
LH: loop header
LB: loop body
LE: loop exit
PB: predicated region body
PF: predicated region fallthrough
CT: control target
= control target key end

     0   :  { %7 = vsyncpa [#allocation3], 0  ;;  %s171_s0 = inlined_call_operand.hbm [shape: f32[8,256], index: 0, kind: input, shape index: {}]   ;;  %s172_s1 = inlined_call_operand.hbm [shape: f32[8,256], index: 1, kind: input, shape index: {}]   ;;  %s173_s2 = inlined_call_operand.vmem [shape: f32[8,2], index: 2, kind: output, shape index: {}]  }
   0x1   :  { %8 = vsyncpa [#allocation5], 0  ;;  %s118_s9 = smov [#allocation2]   ;;  %s119_s11 = smov [#allocation4]  }
   0x2   :  { %s15_s10 = sshll.u32 %s118_s9, 4  ;;  %s25_s12 = sshll.u32 %s119_s11, 4  ;;  %s16_s10 = int_to_ptr.vmem [resolvable:$true] %s15_s10  ;;  %s26_s12 = int_to_ptr.vmem [resolvable:$true] %s25_s12 }
   0x3   :  { %s70_s15 = scalar_lea.hbm %s171_s0, 256 }
   0x4   :  { %p71_p0 = scmp.ne.s32.totalorder %s171_s0, %s70_s15  ;;  %p74_p1 = scmp.lt.u32.totalorder %s70_s15, %s171_s0 }
   0x6   :  { %p76_p2 = pnand %p74_p1, %p71_p0 }
   0x8   :  { %79 = shalt.err (!%p76_p2)
}
   0x9   :  { %s80_s20 = scalar_lea.vmem %s16_s10, 256  ;;  %p85_p4 = scmp.lt.s32.totalorder %s16_s10, %s16_s10 }
   0xa   :  { %p81_p3 = scmp.ne.s32.totalorder %s16_s10, %s80_s20  ;;  %p86_p5 = scmp.lt.s32.totalorder %s80_s20, %s80_s20 }
   0xc   :  { %p87_p6 = por %p86_p5, %p85_p4 }
   0xe   :  { %p88_p7 = pnand %p87_p6, %p81_p3 }
  0x10   :  { %91 = shalt.err (!%p88_p7)
}
  0x11   :  { %18 = dma.hbm_to_vmem [thread:$0]  %s171_s0, 256, %s16_s10, [#allocation3]  }
  0x12   :  { %s92_s25 = scalar_lea.hbm %s172_s1, 256 }
  0x13   :  { %p93_p8 = scmp.ne.s32.totalorder %s172_s1, %s92_s25  ;;  %p96_p9 = scmp.lt.u32.totalorder %s92_s25, %s172_s1 }
  0x15   :  { %p98_p10 = pnand %p96_p9, %p93_p8 }
  0x17   :  { %101 = shalt.err (!%p98_p10)
}
  0x18   :  { %s102_s30 = scalar_lea.vmem %s26_s12, 256  ;;  %p107_p12 = scmp.lt.s32.totalorder %s26_s12, %s26_s12 }
  0x19   :  { %p103_p11 = scmp.ne.s32.totalorder %s26_s12, %s102_s30  ;;  %p108_p13 = scmp.lt.s32.totalorder %s102_s30, %s102_s30 }
  0x1b   :  { %p109_p0 = por %p108_p13, %p107_p12 }
  0x1d   :  { %p110_p1 = pnand %p109_p0, %p103_p11 }
  0x1f   :  { %113 = shalt.err (!%p110_p1)
}
  0x20   :  { %28 = dma.hbm_to_vmem [thread:$0]  %s172_s1, 256, %s26_s12, [#allocation5]  }
  0x21   :  { %114 = dma.done.wait [#allocation3], 256  }
  0x22   :  { %115 = vsyncadd [#allocation3], 4294967040 }
  0x23   :  { %116 = dma.done.wait [#allocation5], 256  }
  0x24   :  { %117 = vsyncadd [#allocation5], 4294967040  ;;  %vm55_vm0 = vcmask 15360   ;;  %v120_v0 = vmov 0.0   ;;  %v35_v1 = vld [vmem:[#allocation2] sm:$0xff]  ;;  %v36_v2 = vld [vmem:[#allocation2 + $0x8] sm:$0xff] }
  0x25   :  { %56 = vst.msk [vmem:[%s173_s2] sm:$0xff] %vm55_vm0, %v120_v0  ;;  %v37_v3 = vld [vmem:[#allocation4] sm:$0xff]  ;;  %v38_v4 = vld [vmem:[#allocation4 + $0x8] sm:$0xff]  ;;  %vm49_vm1 = vcmask 7168  }
  0x26   :  { %v39_v5 = vmul.f32 %v37_v3, %v35_v1  ;;  %v40_v6 = vmul.f32 %v38_v4, %v36_v2  ;;  %v44_v7 = vadd.f32 %v37_v3, %v35_v1  ;;  %v45_v8 = vadd.f32 %v38_v4, %v36_v2 }
  0x28   :  { %v41_v9 = vadd.f32 %v40_v6, %v39_v5  ;;  %v46_v10 = vadd.f32 %v45_v8, %v44_v7 }
  0x2a   :  { %42 = vadd.xlane.f32.xlu0 %v41_v9 }
  0x2c   :  { %v57_v12 = vld [vmem:[%s173_s2] sm:$0xff] }
  0x2e   :  { %47 = vadd.xlane.f32.xlu0 %v46_v10 }
  0xb7   :  { %v43_v11 = vpop.xlane.xlu0 %42 }
  0xbb   :  { %v48_v13 = vpop.xlane.xlu0 %47 }
  0xbc   :  { %v50_v14 = vsel %vm49_vm1, %v43_v11, %v48_v13 }
  0xbd   :  { %v58_v15 = vadd.f32 %v57_v12, %v50_v14 }
  0xbf   :  { %60 = vst.msk [vmem:[%s173_s2] sm:$0xff] %vm55_vm0, %v58_v15 }
  0xc0   :  { %65 = vsyncpa [#allocation3], 1 }
  0xc1   :  { %66 = vsyncpa [#allocation5], 1 }

</bundles_post_ra>
